<compile_context>
chip_gen: v6e
topology: v6e:2x2x1
jax: 0.10.0
libtpu: 0.0.40
codegen_flags: <defaults>
</compile_context>

<pallas_src>
import jax
import jax.numpy as jnp
from jax.experimental import pallas as pl
from jax.experimental.pallas import tpu as pltpu


# ----------------------------- helpers ---------------------------------------

def _round_up(n, m):
    return ((n + m - 1) // m) * m


def _cdiv(a, b):
    return -(-a // b)


# ----------------------------- Pallas kernel --------------------------------

def _make_kernel(S, L, Ls, Din, Ds, H, tb):
    bf16 = jnp.bfloat16

    def kernel(x_ref, eps_ref, w1_ref, b1_ref, wmv_ref, bmv_ref,
               wd1_ref, bd1_ref, wd2_ref, bd2_ref,
               mlv_ref, samples_ref, logits_ref):
        # ---- encoder: bf16 operands into the MXU, f32 accumulate ----
        x = x_ref[...].astype(bf16)
        h = jnp.tanh(
            jnp.dot(x, w1_ref[...], preferred_element_type=jnp.float32)
            + b1_ref[...])
        # fused mu|logvar projection: one (H, 2L) matmul, one (tb, 2L) store
        mlv = (jnp.dot(h.astype(bf16), wmv_ref[...],
                       preferred_element_type=jnp.float32) + bmv_ref[...])
        mlv_ref[...] = mlv
        mu = mlv[:, :L]
        std = jnp.exp(0.5 * mlv[:, L:])

        # ---- reparameterize + decoder (lane-stride-aligned wide layout) ----
        wd1 = wd1_ref[...]
        wd2 = wd2_ref[...]
        # hoist bias broadcasts out of the unrolled S loop (no broadcast CSE)
        bd1b = jnp.broadcast_to(bd1_ref[...], (tb, H))
        bd2b = jnp.broadcast_to(bd2_ref[...], (tb, Din))
        # S is small here (2); for S >= 8 these should be row-stacked into a
        # single (S*tb, L)@(L, H) / (S*tb, H)@(H, Din) matmul pair instead.
        for s in range(S):
            eps_s = eps_ref[:, s * Ls:s * Ls + L]
            z = mu + std * eps_s
            samples_ref[:, s * Ls:s * Ls + L] = z
            hd = jnp.tanh(
                jnp.dot(z.astype(bf16), wd1,
                        preferred_element_type=jnp.float32) + bd1b)
            logits_ref[:, s * Ds:s * Ds + Din] = (
                jnp.dot(hd.astype(bf16), wd2,
                        preferred_element_type=jnp.float32) + bd2b)

    return kernel


# ------------------------------ Wrapper --------------------------------------

def hvae_forward(x, params, eps, *, tile_rows=512):
    """Mirrors HVAE.forward: returns ((mu, logvar), output, reshaped_samples)."""
    B, Din = x.shape
    S, L = eps.shape[1], eps.shape[2]
    H = params["enc_w1"].shape[1]
    Ls = _round_up(L, 128)     # per-sample lane stride for samples
    Ds = _round_up(Din, 128)   # per-sample lane stride for logits

    # bf16 weights (halves DMA + resident VMEM, feeds the MXU at bf16 peak)
    w1 = params["enc_w1"].astype(jnp.bfloat16)
    wmv = params["enc_wmv"].astype(jnp.bfloat16)
    wd1 = params["dec_w1"].astype(jnp.bfloat16)
    wd2 = params["dec_w2"].astype(jnp.bfloat16)
    b1, bmv = params["enc_b1"], params["enc_bmv"]
    bd1, bd2 = params["dec_b1"], params["dec_b2"]

    # lane-stride-padded eps layout: sample s of row b lives at [s*Ls, s*Ls+L)
    if Ls == L:
        eps_wide = eps.reshape(B, S * L)
    else:
        eps_wide = jnp.pad(eps, ((0, 0), (0, 0), (0, Ls - L))).reshape(B, S * Ls)

    # ---- batch tile selection: VMEM-budgeted (v7x-safe), minimal pad waste,
    # ---- and >=2 grid steps whenever possible (megacore + pipelining)
    stream_bytes_per_row = 4 * 2 * (Din + S * Ls + 2 * L + S * Ls + S * Ds)
    weight_bytes = (2 * 2 * (Din * H + H * 2 * L + L * H + H * Din)   # bf16, 2-buf
                    + 2 * 4 * (H + 2 * L + H + Din))                  # f32 biases
    budget = 40 * (1 << 20)   # leaves headroom on v7x's 64 MiB; tiny vs 128 MiB
    cap = max(8, min(tile_rows, (budget - weight_bytes) // stream_bytes_per_row))
    cap = max(8, (cap // 8) * 8)
    cap = min(cap, _round_up(B, 8))
    n_tiles = max(_cdiv(B, cap), 2 if B > 8 else 1)
    tb = _round_up(_cdiv(B, n_tiles), 8)
    Bp = _round_up(B, tb)

    if Bp != B:
        x_p = jnp.zeros((Bp, Din), x.dtype).at[:B].set(x)
        eps_p = jnp.zeros((Bp, S * Ls), eps.dtype).at[:B].set(eps_wide)
    else:
        x_p, eps_p = x, eps_wide

    grid = (Bp // tb,)
    row_map = lambda i: (i, 0)
    const_map = lambda i: (0, 0)

    out_shapes = (
        jax.ShapeDtypeStruct((Bp, 2 * L), jnp.float32),    # fused mu|logvar
        jax.ShapeDtypeStruct((Bp, S * Ls), jnp.float32),   # samples (wide)
        jax.ShapeDtypeStruct((Bp, S * Ds), jnp.float32),   # logits  (wide)
    )

    flops = 2 * Bp * (Din * H + H * 2 * L + S * (L * H + H * Din))
    transcendentals = Bp * (H + L + S * H)
    bytes_accessed = (4 * Bp * (Din + S * Ls)                # x + eps
                      + 4 * Bp * (2 * L + S * Ls + S * Ds)   # outputs
                      + weight_bytes // 2)                   # weights (one pass)

    vmem_limit = int(min(60 * (1 << 20),
                         max(16 * (1 << 20),
                             weight_bytes + 2 * tb * stream_bytes_per_row)))

    kernel = _make_kernel(S, L, Ls, Din, Ds, H, tb)

    mlv, samples_w, logits_w = pl.pallas_call(
        kernel,
        out_shape=out_shapes,
        grid=grid,
        in_specs=[
            pl.BlockSpec((tb, Din), row_map),        # x tile
            pl.BlockSpec((tb, S * Ls), row_map),     # eps tile (wide)
            pl.BlockSpec((Din, H), const_map),       # enc_w1   (resident, bf16)
            pl.BlockSpec((1, H), const_map),         # enc_b1
            pl.BlockSpec((H, 2 * L), const_map),     # enc_wmv  (fused mu|logvar)
            pl.BlockSpec((1, 2 * L), const_map),     # enc_bmv
            pl.BlockSpec((L, H), const_map),         # dec_w1
            pl.BlockSpec((1, H), const_map),         # dec_b1
            pl.BlockSpec((H, Din), const_map),       # dec_w2
            pl.BlockSpec((1, Din), const_map),       # dec_b2
        ],
        out_specs=[
            pl.BlockSpec((tb, 2 * L), row_map),
            pl.BlockSpec((tb, S * Ls), row_map),
            pl.BlockSpec((tb, S * Ds), row_map),
        ],
        compiler_params=pltpu.CompilerParams(
            dimension_semantics=("parallel",),
            vmem_limit_bytes=vmem_limit,
        ),
        cost_estimate=pl.CostEstimate(
            flops=flops,
            transcendentals=transcendentals,
            bytes_accessed=bytes_accessed,
        ),
    )(x_p, eps_p, w1, b1, wmv, bmv, wd1, bd1, wd2, bd2)

    mu = mlv[:B, :L]
    logvar = mlv[:B, L:]
    if Ls == L:
        reshaped_samples = samples_w[:B].reshape(B * S, L)
    else:
        reshaped_samples = samples_w[:B].reshape(B, S, Ls)[:, :, :L].reshape(B * S, L)
    if Ds == Din:
        output = logits_w[:B].reshape(B, S, Din)
    else:
        output = logits_w[:B].reshape(B, S, Ds)[:, :, :Din]
    return (mu, logvar), output, reshaped_samples


# ----------------------------- Param init -----------------------------------

def init_params(key, in_dim, hidden, latent):
    ks = jax.random.split(key, 4)
    s = 0.05
    return {
        "enc_w1": s * jax.random.normal(ks[0], (in_dim, hidden), jnp.float32),
        "enc_b1": jnp.zeros((1, hidden), jnp.float32),
        # fused mu|logvar projection: (hidden, 2*latent)
        "enc_wmv": s * jax.random.normal(ks[1], (hidden, 2 * latent), jnp.float32),
        "enc_bmv": jnp.zeros((1, 2 * latent), jnp.float32),
        "dec_w1": s * jax.random.normal(ks[2], (latent, hidden), jnp.float32),
        "dec_b1": jnp.zeros((1, hidden), jnp.float32),
        "dec_w2": s * jax.random.normal(ks[3], (hidden, in_dim), jnp.float32),
        "dec_b2": jnp.zeros((1, in_dim), jnp.float32),
    }


def reference_forward(x, params, eps):
    """Pure-JAX reference using the same bf16 matmul operands as the kernel."""
    bf = jnp.bfloat16
    L = eps.shape[2]
    h = jnp.tanh(jnp.dot(x.astype(bf), params["enc_w1"].astype(bf),
                         preferred_element_type=jnp.float32) + params["enc_b1"])
    mlv = jnp.dot(h.astype(bf), params["enc_wmv"].astype(bf),
                  preferred_element_type=jnp.float32) + params["enc_bmv"]
    mu, lv = mlv[:, :L], mlv[:, L:]
    samples = mu[:, None, :] + jnp.exp(0.5 * lv)[:, None, :] * eps
    B, S, _ = samples.shape
    z = samples.reshape(B * S, L)
    hd = jnp.tanh(jnp.dot(z.astype(bf), params["dec_w1"].astype(bf),
                          preferred_element_type=jnp.float32) + params["dec_b1"])
    logits = jnp.dot(hd.astype(bf), params["dec_w2"].astype(bf),
                     preferred_element_type=jnp.float32) + params["dec_b2"]
    return (mu, lv), logits.reshape(B, S, -1), z


# TODO(synk): HVAE.loss (BCEWithLogits/BCE/KL + roc_auc_score/average_precision
# metrics) is training-only host-side code, not part of the forward pass.

if __name__ == "__main__":
    batch, sample_size = 8, 2
    in_dim, hidden, latent = 128, 128, 128

    key = jax.random.PRNGKey(0)
    kx, keps, kp = jax.random.split(key, 3)
    x = jax.random.uniform(kx, (batch, in_dim), jnp.float32)
    eps = jax.random.normal(keps, (batch, sample_size, latent), jnp.float32)
    params = init_params(kp, in_dim, hidden, latent)

    (mu, logvar), output, reshaped_samples = jax.block_until_ready(
        hvae_forward(x, params, eps)
    )

    (mu_r, lv_r), out_r, z_r = reference_forward(x, params, eps)
    assert mu.shape == (batch, latent)
    assert logvar.shape == (batch, latent)
    assert output.shape == (batch, sample_size, in_dim)
    assert reshaped_samples.shape == (batch * sample_size, latent)
    assert jnp.allclose(mu, mu_r, atol=5e-3)
    assert jnp.allclose(logvar, lv_r, atol=5e-3)
    assert jnp.allclose(output, out_r, atol=5e-3)
    assert jnp.allclose(reshaped_samples, z_r, atol=5e-3)

    print("KERNEL_OK")
</pallas_src>

<mosaic_0001>
module attributes {stable_mosaic.version = 11 : i64} {
  func.func @kernel(%arg0: i32, %arg1: memref<8x128xf32, #tpu.memory_space<vmem>>, %arg2: memref<8x256xf32, #tpu.memory_space<vmem>>, %arg3: memref<128x128xbf16, #tpu.memory_space<vmem>>, %arg4: memref<1x128xf32, #tpu.memory_space<vmem>>, %arg5: memref<128x256xbf16, #tpu.memory_space<vmem>>, %arg6: memref<1x256xf32, #tpu.memory_space<vmem>>, %arg7: memref<128x128xbf16, #tpu.memory_space<vmem>>, %arg8: memref<1x128xf32, #tpu.memory_space<vmem>>, %arg9: memref<128x128xbf16, #tpu.memory_space<vmem>>, %arg10: memref<1x128xf32, #tpu.memory_space<vmem>>, %arg11: memref<8x256xf32, #tpu.memory_space<vmem>>, %arg12: memref<8x256xf32, #tpu.memory_space<vmem>>, %arg13: memref<8x256xf32, #tpu.memory_space<vmem>>) attributes {dimension_semantics = [#tpu.dimension_semantics<parallel>], iteration_bounds = array<i64: 1>, scalar_prefetch = 0 : i64, scratch_operands = 0 : i64, tpu.core_type = #tpu.core_type<tc>, window_params = [{transform_indices = @transform_0, window_bounds = array<i64: 8, 128>}, {transform_indices = @transform_1, window_bounds = array<i64: 8, 256>}, {pipeline_mode = #tpu.pipeline_mode<synchronous>, transform_indices = @transform_2, window_bounds = array<i64: 128, 128>}, {pipeline_mode = #tpu.pipeline_mode<synchronous>, transform_indices = @transform_3, window_bounds = array<i64: 1, 128>}, {pipeline_mode = #tpu.pipeline_mode<synchronous>, transform_indices = @transform_4, window_bounds = array<i64: 128, 256>}, {pipeline_mode = #tpu.pipeline_mode<synchronous>, transform_indices = @transform_5, window_bounds = array<i64: 1, 256>}, {pipeline_mode = #tpu.pipeline_mode<synchronous>, transform_indices = @transform_6, window_bounds = array<i64: 128, 128>}, {pipeline_mode = #tpu.pipeline_mode<synchronous>, transform_indices = @transform_7, window_bounds = array<i64: 1, 128>}, {pipeline_mode = #tpu.pipeline_mode<synchronous>, transform_indices = @transform_8, window_bounds = array<i64: 128, 128>}, {pipeline_mode = #tpu.pipeline_mode<synchronous>, transform_indices = @transform_9, window_bounds = array<i64: 1, 128>}, {transform_indices = @transform_10, window_bounds = array<i64: 8, 256>}, {transform_indices = @transform_11, window_bounds = array<i64: 8, 256>}, {transform_indices = @transform_12, window_bounds = array<i64: 8, 256>}]} {
    %c0 = arith.constant 0 : index
    %c0_0 = arith.constant 0 : index
    %0 = vector.load %arg1[%c0, %c0_0] : memref<8x128xf32, #tpu.memory_space<vmem>>, vector<8x128xf32>
    %1 = arith.truncf %0 : vector<8x128xf32> to vector<8x128xbf16>
    %c0_1 = arith.constant 0 : index
    %c0_2 = arith.constant 0 : index
    %2 = vector.load %arg3[%c0_1, %c0_2] : memref<128x128xbf16, #tpu.memory_space<vmem>>, vector<128x128xbf16>
    %cst = arith.constant dense<0.000000e+00> : vector<8x128xf32>
    %3 = tpu.matmul %1, %2, %cst {dimension_numbers = #tpu.dot_dimension_numbers<[1], [0], [0], [1], [0, 0, 1, 1], [], []>} : vector<8x128xbf16>, vector<128x128xbf16>, vector<8x128xf32> -> vector<8x128xf32>
    %c0_3 = arith.constant 0 : index
    %c0_4 = arith.constant 0 : index
    %4 = vector.load %arg4[%c0_3, %c0_4] : memref<1x128xf32, #tpu.memory_space<vmem>>, vector<1x128xf32>
    %5 = vector.broadcast %4 : vector<1x128xf32> to vector<8x128xf32>
    %6 = arith.addf %3, %5 : vector<8x128xf32>
    %7 = math.tanh %6 : vector<8x128xf32>
    %8 = arith.truncf %7 : vector<8x128xf32> to vector<8x128xbf16>
    %c0_5 = arith.constant 0 : index
    %c0_6 = arith.constant 0 : index
    %9 = vector.load %arg5[%c0_5, %c0_6] : memref<128x256xbf16, #tpu.memory_space<vmem>>, vector<128x256xbf16>
    %cst_7 = arith.constant dense<0.000000e+00> : vector<8x256xf32>
    %10 = tpu.matmul %8, %9, %cst_7 {dimension_numbers = #tpu.dot_dimension_numbers<[1], [0], [0], [1], [0, 0, 1, 1], [], []>} : vector<8x128xbf16>, vector<128x256xbf16>, vector<8x256xf32> -> vector<8x256xf32>
    %c0_8 = arith.constant 0 : index
    %c0_9 = arith.constant 0 : index
    %11 = vector.load %arg6[%c0_8, %c0_9] : memref<1x256xf32, #tpu.memory_space<vmem>>, vector<1x256xf32>
    %12 = vector.broadcast %11 : vector<1x256xf32> to vector<8x256xf32>
    %13 = arith.addf %10, %12 : vector<8x256xf32>
    %c0_10 = arith.constant 0 : index
    %c0_11 = arith.constant 0 : index
    %14 = vector.load %arg11[%c0_10, %c0_11] : memref<8x256xf32, #tpu.memory_space<vmem>>, vector<8x256xf32>
    tpu.vector_store %arg11[%c0_10, %c0_11], %13 {strides = array<i32>} : memref<8x256xf32, #tpu.memory_space<vmem>>, vector<8x256xf32>,
    %15 = vector.extract_strided_slice %13 {offsets = [0, 0], sizes = [8, 128], strides = [1, 1]} : vector<8x256xf32> to vector<8x128xf32>
    %16 = vector.extract_strided_slice %13 {offsets = [0, 128], sizes = [8, 128], strides = [1, 1]} : vector<8x256xf32> to vector<8x128xf32>
    %cst_12 = arith.constant 5.000000e-01 : f32
    %17 = vector.broadcast %cst_12 : f32 to vector<8x128xf32>
    %18 = arith.mulf %17, %16 : vector<8x128xf32>
    %19 = math.exp %18 : vector<8x128xf32>
    %c0_13 = arith.constant 0 : index
    %c0_14 = arith.constant 0 : index
    %20 = vector.load %arg7[%c0_13, %c0_14] : memref<128x128xbf16, #tpu.memory_space<vmem>>, vector<128x128xbf16>
    %c0_15 = arith.constant 0 : index
    %c0_16 = arith.constant 0 : index
    %21 = vector.load %arg9[%c0_15, %c0_16] : memref<128x128xbf16, #tpu.memory_space<vmem>>, vector<128x128xbf16>
    %c0_17 = arith.constant 0 : index
    %c0_18 = arith.constant 0 : index
    %22 = vector.load %arg8[%c0_17, %c0_18] : memref<1x128xf32, #tpu.memory_space<vmem>>, vector<1x128xf32>
    %23 = vector.shape_cast %22 : vector<1x128xf32> to vector<1x128xf32>
    %24 = vector.broadcast %23 : vector<1x128xf32> to vector<8x128xf32>
    %c0_19 = arith.constant 0 : index
    %c0_20 = arith.constant 0 : index
    %25 = vector.load %arg10[%c0_19, %c0_20] : memref<1x128xf32, #tpu.memory_space<vmem>>, vector<1x128xf32>
    %26 = vector.shape_cast %25 : vector<1x128xf32> to vector<1x128xf32>
    %27 = vector.broadcast %26 : vector<1x128xf32> to vector<8x128xf32>
    %c0_21 = arith.constant 0 : index
    %c0_22 = arith.constant 0 : index
    %28 = vector.load %arg2[%c0_21, %c0_22] : memref<8x256xf32, #tpu.memory_space<vmem>>, vector<8x128xf32>
    %29 = arith.mulf %19, %28 : vector<8x128xf32>
    %30 = arith.addf %15, %29 : vector<8x128xf32>
    %c0_23 = arith.constant 0 : index
    %c0_24 = arith.constant 0 : index
    %31 = vector.load %arg12[%c0_23, %c0_24] : memref<8x256xf32, #tpu.memory_space<vmem>>, vector<8x128xf32>
    tpu.vector_store %arg12[%c0_23, %c0_24], %30 {strides = array<i32>} : memref<8x256xf32, #tpu.memory_space<vmem>>, vector<8x128xf32>,
    %32 = arith.truncf %30 : vector<8x128xf32> to vector<8x128xbf16>
    %cst_25 = arith.constant dense<0.000000e+00> : vector<8x128xf32>
    %33 = tpu.matmul %32, %20, %cst_25 {dimension_numbers = #tpu.dot_dimension_numbers<[1], [0], [0], [1], [0, 0, 1, 1], [], []>} : vector<8x128xbf16>, vector<128x128xbf16>, vector<8x128xf32> -> vector<8x128xf32>
    %34 = arith.addf %33, %24 : vector<8x128xf32>
    %35 = math.tanh %34 : vector<8x128xf32>
    %36 = arith.truncf %35 : vector<8x128xf32> to vector<8x128xbf16>
    %cst_26 = arith.constant dense<0.000000e+00> : vector<8x128xf32>
    %37 = tpu.matmul %36, %21, %cst_26 {dimension_numbers = #tpu.dot_dimension_numbers<[1], [0], [0], [1], [0, 0, 1, 1], [], []>} : vector<8x128xbf16>, vector<128x128xbf16>, vector<8x128xf32> -> vector<8x128xf32>
    %38 = arith.addf %37, %27 : vector<8x128xf32>
    %c0_27 = arith.constant 0 : index
    %c0_28 = arith.constant 0 : index
    %39 = vector.load %arg13[%c0_27, %c0_28] : memref<8x256xf32, #tpu.memory_space<vmem>>, vector<8x128xf32>
    tpu.vector_store %arg13[%c0_27, %c0_28], %38 {strides = array<i32>} : memref<8x256xf32, #tpu.memory_space<vmem>>, vector<8x128xf32>,
    %c0_29 = arith.constant 0 : index
    %c128 = arith.constant 128 : index
    %40 = vector.load %arg2[%c0_29, %c128] : memref<8x256xf32, #tpu.memory_space<vmem>>, vector<8x128xf32>
    %41 = arith.mulf %19, %40 : vector<8x128xf32>
    %42 = arith.addf %15, %41 : vector<8x128xf32>
    %c0_30 = arith.constant 0 : index
    %c128_31 = arith.constant 128 : index
    %43 = vector.load %arg12[%c0_30, %c128_31] : memref<8x256xf32, #tpu.memory_space<vmem>>, vector<8x128xf32>
    tpu.vector_store %arg12[%c0_30, %c128_31], %42 {strides = array<i32>} : memref<8x256xf32, #tpu.memory_space<vmem>>, vector<8x128xf32>,
    %44 = arith.truncf %42 : vector<8x128xf32> to vector<8x128xbf16>
    %cst_32 = arith.constant dense<0.000000e+00> : vector<8x128xf32>
    %45 = tpu.matmul %44, %20, %cst_32 {dimension_numbers = #tpu.dot_dimension_numbers<[1], [0], [0], [1], [0, 0, 1, 1], [], []>} : vector<8x128xbf16>, vector<128x128xbf16>, vector<8x128xf32> -> vector<8x128xf32>
    %46 = arith.addf %45, %24 : vector<8x128xf32>
    %47 = math.tanh %46 : vector<8x128xf32>
    %48 = arith.truncf %47 : vector<8x128xf32> to vector<8x128xbf16>
    %cst_33 = arith.constant dense<0.000000e+00> : vector<8x128xf32>
    %49 = tpu.matmul %48, %21, %cst_33 {dimension_numbers = #tpu.dot_dimension_numbers<[1], [0], [0], [1], [0, 0, 1, 1], [], []>} : vector<8x128xbf16>, vector<128x128xbf16>, vector<8x128xf32> -> vector<8x128xf32>
    %50 = arith.addf %49, %27 : vector<8x128xf32>
    %c0_34 = arith.constant 0 : index
    %c128_35 = arith.constant 128 : index
    %51 = vector.load %arg13[%c0_34, %c128_35] : memref<8x256xf32, #tpu.memory_space<vmem>>, vector<8x128xf32>
    tpu.vector_store %arg13[%c0_34, %c128_35], %50 {strides = array<i32>} : memref<8x256xf32, #tpu.memory_space<vmem>>, vector<8x128xf32>,
    return
  }
  func.func @transform_0(%arg0: i32) -> (i32, i32) {
    %c0_i32 = arith.constant 0 : i32
    %c0_i32_0 = arith.constant 0 : i32
    return %arg0, %c0_i32 : i32, i32
  }
  func.func @transform_1(%arg0: i32) -> (i32, i32) {
    %c0_i32 = arith.constant 0 : i32
    %c0_i32_0 = arith.constant 0 : i32
    return %arg0, %c0_i32 : i32, i32
  }
  func.func @transform_2(%arg0: i32) -> (i32, i32) {
    %c0_i32 = arith.constant 0 : i32
    %c0_i32_0 = arith.constant 0 : i32
    %c0_i32_1 = arith.constant 0 : i32
    return %c0_i32, %c0_i32_0 : i32, i32
  }
  func.func @transform_3(%arg0: i32) -> (i32, i32) {
    %c0_i32 = arith.constant 0 : i32
    %c0_i32_0 = arith.constant 0 : i32
    %c0_i32_1 = arith.constant 0 : i32
    return %c0_i32, %c0_i32_0 : i32, i32
  }
  func.func @transform_4(%arg0: i32) -> (i32, i32) {
    %c0_i32 = arith.constant 0 : i32
    %c0_i32_0 = arith.constant 0 : i32
    %c0_i32_1 = arith.constant 0 : i32
    return %c0_i32, %c0_i32_0 : i32, i32
  }
  func.func @transform_5(%arg0: i32) -> (i32, i32) {
    %c0_i32 = arith.constant 0 : i32
    %c0_i32_0 = arith.constant 0 : i32
    %c0_i32_1 = arith.constant 0 : i32
    return %c0_i32, %c0_i32_0 : i32, i32
  }
  func.func @transform_6(%arg0: i32) -> (i32, i32) {
    %c0_i32 = arith.constant 0 : i32
    %c0_i32_0 = arith.constant 0 : i32
    %c0_i32_1 = arith.constant 0 : i32
    return %c0_i32, %c0_i32_0 : i32, i32
  }
  func.func @transform_7(%arg0: i32) -> (i32, i32) {
    %c0_i32 = arith.constant 0 : i32
    %c0_i32_0 = arith.constant 0 : i32
    %c0_i32_1 = arith.constant 0 : i32
    return %c0_i32, %c0_i32_0 : i32, i32
  }
  func.func @transform_8(%arg0: i32) -> (i32, i32) {
    %c0_i32 = arith.constant 0 : i32
    %c0_i32_0 = arith.constant 0 : i32
    %c0_i32_1 = arith.constant 0 : i32
    return %c0_i32, %c0_i32_0 : i32, i32
  }
  func.func @transform_9(%arg0: i32) -> (i32, i32) {
    %c0_i32 = arith.constant 0 : i32
    %c0_i32_0 = arith.constant 0 : i32
    %c0_i32_1 = arith.constant 0 : i32
    return %c0_i32, %c0_i32_0 : i32, i32
  }
  func.func @transform_10(%arg0: i32) -> (i32, i32) {
    %c0_i32 = arith.constant 0 : i32
    %c0_i32_0 = arith.constant 0 : i32
    return %arg0, %c0_i32 : i32, i32
  }
  func.func @transform_11(%arg0: i32) -> (i32, i32) {
    %c0_i32 = arith.constant 0 : i32
    %c0_i32_0 = arith.constant 0 : i32
    return %arg0, %c0_i32 : i32, i32
  }
  func.func @transform_12(%arg0: i32) -> (i32, i32) {
    %c0_i32 = arith.constant 0 : i32
    %c0_i32_0 = arith.constant 0 : i32
    return %arg0, %c0_i32 : i32, i32
  }
}

</mosaic_0001>

<bundles_post_ra>
// kernel: tpu_custom_call.1
= control target key start
LH: loop header
LB: loop body
LE: loop exit
PB: predicated region body
PF: predicated region fallthrough
CT: control target
= control target key end

     0   :  { %18 = vsyncpa [#allocation3], 0  ;;  %s1401_s0 = inlined_call_operand.hbm [shape: f32[8,128], index: 0, kind: input, shape index: {}]   ;;  %s1402_s1 = inlined_call_operand.hbm [shape: f32[8,256], index: 1, kind: input, shape index: {}]   ;;  %s1403_s2 = inlined_call_operand.hbm [shape: bf16[128,128], index: 2, kind: input, shape index: {}]   ;;  %s1404_s3 = inlined_call_operand.vmem [shape: f32[1,128], index: 3, kind: input, shape index: {}]   ;;  %s1405_s4 = inlined_call_operand.hbm [shape: bf16[128,256], index: 4, kind: input, shape index: {}]   ;;  %s1406_s5 = inlined_call_operand.vmem [shape: f32[1,256], index: 5, kind: input, shape index: {}]   ;;  %s1407_s6 = inlined_call_operand.hbm [shape: bf16[128,128], index: 6, kind: input, shape index: {}]   ;;  %s1408_s7 = inlined_call_operand.vmem [shape: f32[1,128], index: 7, kind: input, shape index: {}]   ;;  %s1409_s8 = inlined_call_operand.hbm [shape: bf16[128,128], index: 8, kind: input, shape index: {}]   ;;  %s1410_s9 = inlined_call_operand.vmem [shape: f32[1,128], index: 9, kind: input, shape index: {}]   ;;  %s1411_s10 = inlined_call_operand.hbm [shape: f32[8,256], index: 10, kind: output, shape index: {0}]   ;;  %s1412_s11 = inlined_call_operand.hbm [shape: f32[8,256], index: 11, kind: output, shape index: {1}]   ;;  %s1413_s12 = inlined_call_operand.hbm [shape: f32[8,256], index: 12, kind: output, shape index: {2}]  }
   0x1   :  { %19 = vsyncpa [#allocation6], 0 }
   0x2   :  { %20 = vsyncpa [#allocation9], 0 }
   0x3   :  { %21 = vsyncpa [#allocation12], 0 }
   0x4   :  { %22 = vsyncpa [#allocation4], 0 }
   0x5   :  { %23 = vsyncpa [#allocation15], 0  ;;  %s1203_s21 = smov [#allocation5]   ;;  %s1204_s23 = smov [#allocation8]  }
   0x6   :  { %s40_s22 = sshll.u32 %s1203_s21, 4  ;;  %s63_s24 = sshll.u32 %s1204_s23, 4  ;;  %s41_s22 = int_to_ptr.vmem [resolvable:$true] %s40_s22  ;;  %s64_s24 = int_to_ptr.vmem [resolvable:$true] %s63_s24 }
   0x7   :  { %s1019_s25 = scalar_lea.vmem %s41_s22, 256  ;;  %p1024_p1 = scmp.lt.s32.totalorder %s41_s22, %s41_s22 }
   0x8   :  { %p1020_p0 = scmp.ne.s32.totalorder %s41_s22, %s1019_s25  ;;  %p1025_p2 = scmp.lt.s32.totalorder %s1019_s25, %s1019_s25 }
   0xa   :  { %p1026_p3 = por %p1025_p2, %p1024_p1 }
   0xc   :  { %p1027_p4 = pnand %p1026_p3, %p1020_p0 }
   0xe   :  { %1030 = shalt.err (!%p1027_p4)
}
   0xf   :  { %43 = dma.hbm_to_vmem [thread:$0]  %s1402_s1, 256, %s41_s22, [#allocation6]  }
  0x10   :  { %s1039_s28 = scalar_lea.vmem %s64_s24, 2048  ;;  %p1044_p6 = scmp.lt.s32.totalorder %s64_s24, %s64_s24 }
  0x11   :  { %p1040_p5 = scmp.ne.s32.totalorder %s64_s24, %s1039_s28  ;;  %p1045_p7 = scmp.lt.s32.totalorder %s1039_s28, %s1039_s28 }
  0x13   :  { %p1046_p8 = por %p1045_p7, %p1044_p6 }
  0x15   :  { %p1047_p9 = pnand %p1046_p8, %p1040_p5 }
  0x17   :  { %1050 = shalt.err (!%p1047_p9)
}
  0x18   :  { %s1205_s29 = smov 128   ;;  %s1206_s30 = smov 8  }
  0x19   :  { %69 = dma.hbm_to_vmem [thread:$0]  %s1405_s4, 2048, %s64_s24, [#allocation9], %s1205_s29, %s1205_s29, %s1206_s30  }
  0x1a   :  { %s1207_s15 = smov [#allocation2]   ;;  %s1208_s17 = smov [#allocation7]  }
  0x1b   :  { %s30_s16 = sshll.u32 %s1207_s15, 4  ;;  %s49_s18 = sshll.u32 %s1208_s17, 4  ;;  %s31_s16 = int_to_ptr.vmem [resolvable:$true] %s30_s16  ;;  %s50_s18 = int_to_ptr.vmem [resolvable:$true] %s49_s18 }
  0x1c   :  { %s1059_s1 = scalar_lea.vmem %s31_s16, 128  ;;  %p1064_p11 = scmp.lt.s32.totalorder %s31_s16, %s31_s16 }
  0x1d   :  { %p1060_p10 = scmp.ne.s32.totalorder %s31_s16, %s1059_s1  ;;  %p1065_p12 = scmp.lt.s32.totalorder %s1059_s1, %s1059_s1 }
  0x1f   :  { %p1066_p13 = por %p1065_p12, %p1064_p11 }
  0x21   :  { %p1067_p0 = pnand %p1066_p13, %p1060_p10 }
  0x23   :  { %1070 = shalt.err (!%p1067_p0)
}
  0x24   :  { %33 = dma.hbm_to_vmem [thread:$0]  %s1401_s0, 128, %s31_s16, [#allocation3]  }
  0x25   :  { %s1079_s21 = scalar_lea.vmem %s50_s18, 1024  ;;  %p1084_p2 = scmp.lt.s32.totalorder %s50_s18, %s50_s18 }
  0x26   :  { %p1080_p1 = scmp.ne.s32.totalorder %s50_s18, %s1079_s21  ;;  %p1085_p3 = scmp.lt.s32.totalorder %s1079_s21, %s1079_s21 }
  0x28   :  { %p1086_p4 = por %p1085_p3, %p1084_p2 }
  0x2a   :  { %p1087_p5 = pnand %p1086_p4, %p1080_p1 }
  0x2c   :  { %1090 = shalt.err (!%p1087_p5)
}
  0x2d   :  { %s1209_s4 = smov 64   ;;  %s1210_s22 = smov 4  }
  0x2e   :  { %55 = dma.hbm_to_vmem [thread:$0]  %s1403_s2, 1024, %s50_s18, [#allocation6], %s1209_s4, %s1209_s4, %s1210_s22  }
  0x2f   :  { %s1211_s25 = smov [#allocation10]   ;;  %s1212_s27 = smov [#allocation11]  }
  0x30   :  { %s77_s26 = sshll.u32 %s1211_s25, 4  ;;  %s91_s28 = sshll.u32 %s1212_s27, 4  ;;  %s78_s26 = int_to_ptr.vmem [resolvable:$true] %s77_s26  ;;  %s92_s28 = int_to_ptr.vmem [resolvable:$true] %s91_s28 }
  0x31   :  { %s1099_s0 = scalar_lea.vmem %s78_s26, 1024  ;;  %p1104_p7 = scmp.lt.s32.totalorder %s78_s26, %s78_s26 }
  0x32   :  { %p1100_p6 = scmp.ne.s32.totalorder %s78_s26, %s1099_s0  ;;  %p1105_p8 = scmp.lt.s32.totalorder %s1099_s0, %s1099_s0 }
  0x34   :  { %p1106_p9 = por %p1105_p8, %p1104_p7 }
  0x36   :  { %p1107_p10 = pnand %p1106_p9, %p1100_p6 }
  0x38   :  { %1110 = shalt.err (!%p1107_p10)
}
  0x39   :  { %83 = dma.hbm_to_vmem [thread:$0]  %s1407_s6, 1024, %s78_s26, [#allocation9], %s1209_s4, %s1209_s4, %s1210_s22  }
  0x3a   :  { %s1119_s13 = scalar_lea.vmem %s92_s28, 1024  ;;  %p1124_p12 = scmp.lt.s32.totalorder %s92_s28, %s92_s28 }
  0x3b   :  { %p1120_p11 = scmp.ne.s32.totalorder %s92_s28, %s1119_s13  ;;  %p1125_p13 = scmp.lt.s32.totalorder %s1119_s13, %s1119_s13 }
  0x3d   :  { %p1126_p0 = por %p1125_p13, %p1124_p12 }
  0x3f   :  { %p1127_p1 = pnand %p1126_p0, %p1120_p11 }
  0x41   :  { %1130 = shalt.err (!%p1127_p1)
}
  0x42   :  { %97 = dma.hbm_to_vmem [thread:$0]  %s1409_s8, 1024, %s92_s28, [#allocation12], %s1209_s4, %s1209_s4, %s1210_s22  }
  0x43   :  { %1191 = dma.done.wait [#allocation3], 128  }
  0x44   :  { %1192 = vsyncadd [#allocation3], 4294967168 }
  0x45   :  { %1193 = dma.done.wait [#allocation6], 1280  }
  0x46   :  { %1194 = vsyncadd [#allocation6], 4294966016 }
  0x47   :  { %1195 = dma.done.wait [#allocation9], 3072  }
  0x48   :  { %1196 = vsyncadd [#allocation9], 4294964224 }
  0x49   :  { %1197 = dma.done.wait [#allocation12], 1024  }
  0x4a   :  { %1198 = vsyncadd [#allocation12], 4294966272  ;;  %v1213_v0 = vmov 0.0   ;;  %vm1214_vm0 = vmmov 0   ;;  %v955_v1 = vld [vmem:[#allocation7 + $0x38] sm:$0xff]   ;;  %v956_v2 = vld [vmem:[#allocation7 + $0x30] sm:$0xff]   ;;  %v252_v48 = vlaneseq }
  0x4b   :  { %839 = vmatprep.subr.bf16.mxu0 %v1213_v0  ;;  %855 = vmatprep.mubr.msk.bf16.mxu0 %vm1214_vm0, %v1213_v0  ;;  %v957_v3 = vld [vmem:[#allocation7 + $0x28] sm:$0xff]   ;;  %v963_v4 = vld [vmem:[#allocation8 + $0x74] ss:$8 sps:$4 sm:$0xff]   ;;  %v965_v5 = vld [vmem:[#allocation8 + $0x70] ss:$8 sps:$4 sm:$0xff]   ;;  %v1215_v25 = vmov 0  }
  0x4c   :  { %840 = vmatpush3.bf16.msra.mxu0 %v955_v1  ;;  %v958_v6 = vld [vmem:[#allocation7 + $0x20] sm:$0xff]   ;;  %342 = vmatprep.subr.bf16.mxu1 %v963_v4  ;;  %v959_v9 = vld [vmem:[#allocation7 + $0x18] sm:$0xff]   ;;  %v960_v13 = vld [vmem:[#allocation7 + $0x10] sm:$0xff]   ;;  %v253_v49 = vshrl.u32 %v252_v48, 7  ;;  %s1217_s18 = smov [#allocation13]  }
  0x4d   :  { %841 = vmatprep.subr.bf16.mxu0 %v1213_v0  ;;  %v966_v7 = vld [vmem:[#allocation8 + $0x64] ss:$8 sps:$4 sm:$0xff]   ;;  %343 = vmatpush1.bf16.msra.mxu1 %v965_v5  ;;  %v968_v8 = vld [vmem:[#allocation8 + $0x60] ss:$8 sps:$4 sm:$0xff]   ;;  %v969_v10 = vld [vmem:[#allocation8 + $0x54] ss:$8 sps:$4 sm:$0xff]  }
  0x4e   :  { %344 = vmatprep.subr.bf16.mxu1 %v966_v7  ;;  %v971_v11 = vld [vmem:[#allocation8 + $0x50] ss:$8 sps:$4 sm:$0xff]   ;;  %v972_v12 = vld [vmem:[#allocation8 + $0x44] ss:$8 sps:$4 sm:$0xff]   ;;  %v974_v18 = vld [vmem:[#allocation8 + $0x40] ss:$8 sps:$4 sm:$0xff]   ;;  %374 = vmatprep.mubr.bf16.mxu1 %v1215_v25 }
  0x4f   :  { %v961_v14 = vld [vmem:[#allocation7 + $0x8] sm:$0xff]   ;;  %v962_v15 = vld [vmem:[#allocation7] sm:$0xff]   ;;  %v975_v19 = vld [vmem:[#allocation8 + $0x34] ss:$8 sps:$4 sm:$0xff]   ;;  %v254_v50 = vsub.s32 0, %v253_v49  ;;  %v258_v52 = vsub.s32 1, %v253_v49 }
  0x50   :  { %842 = vmatpush3.bf16.msra.mxu0 %v956_v2  ;;  %v119_v16 = vld [vmem:[#allocation2] sm:$0xff]  ;;  %v977_v20 = vld [vmem:[#allocation8 + $0x30] ss:$8 sps:$4 sm:$0xff]   ;;  %v981_v23 = vld [vmem:[#allocation8 + $0x14] ss:$8 sps:$4 sm:$0xff]   ;;  %s712_s1 = sshll.u32 %s1217_s18, 4  ;;  %s713_s1 = int_to_ptr.vmem [resolvable:$true] %s712_s1 }
  0x51   :  { %843 = vmatprep.subr.bf16.mxu0 %v1213_v0  ;;  %345 = vmatpush1.bf16.msra.mxu1 %v968_v8  ;;  %v120_v17 = vpack.c.bf16 %v119_v16, %v119_v16  ;;  %v978_v21 = vld [vmem:[#allocation8 + $0x24] ss:$8 sps:$4 sm:$0xff]   ;;  %v980_v22 = vld [vmem:[#allocation8 + $0x20] ss:$8 sps:$4 sm:$0xff]   ;;  %v983_v24 = vld [vmem:[#allocation8 + $0x10] ss:$8 sps:$4 sm:$0xff]  }
  0x52   :  { %346 = vmatprep.subr.bf16.mxu1 %v969_v10  ;;  %v984_v26 = vld [vmem:[#allocation8 + $0x4] ss:$8 sps:$4 sm:$0xff]   ;;  %v986_v27 = vld [vmem:[#allocation8] ss:$8 sps:$4 sm:$0xff]   ;;  %v1316_v28 = vld [vmem:[#allocation10 + $0x38] sm:$0xff]  }
  0x53   :  { %v751_v29 = vld [vmem:[%s1404_s3] ss:$0 sm:$0xff]  ;;  %v1325_v37 = vld [vmem:[#allocation10 + $0x30] sm:$0xff]   ;;  %v990_v39 = vld [vmem:[#allocation10 + $0x20] sm:$0xff]  }
  0x54   :  { %844 = vmatpush3.bf16.msra.mxu0 %v957_v3  ;;  %v1329_v38 = vld [vmem:[#allocation10 + $0x28] sm:$0xff]   ;;  %v991_v40 = vld [vmem:[#allocation10 + $0x18] sm:$0xff]   ;;  %v992_v41 = vld [vmem:[#allocation10 + $0x10] sm:$0xff]  }
  0x55   :  { %845 = vmatprep.subr.bf16.mxu0 %v1213_v0  ;;  %347 = vmatpush1.bf16.msra.mxu1 %v971_v11  ;;  %v993_v42 = vld [vmem:[#allocation10 + $0x8] sm:$0xff]   ;;  %v994_v43 = vld [vmem:[#allocation10] sm:$0xff]   ;;  %v1338_v44 = vld [vmem:[#allocation11 + $0x38] sm:$0xff]  }
  0x56   :  { %348 = vmatprep.subr.bf16.mxu1 %v972_v12  ;;  %v1341_v45 = vld [vmem:[#allocation11 + $0x30] sm:$0xff]   ;;  %v1345_v46 = vld [vmem:[#allocation11 + $0x28] sm:$0xff]   ;;  %v1349_v47 = vld [vmem:[#allocation11 + $0x20] sm:$0xff]  }
  0x57   :  { %v250_v51 = vld [vmem:[%s1406_s5] sm:$0x3]  ;;  %v434_v63 = vld [vmem:[#allocation5] sm:$0xff]  ;;  %v618_v1 = vld [vmem:[#allocation5 + $0x8] sm:$0xff] }
  0x58   :  { %846 = vmatpush3.bf16.msra.mxu0 %v958_v6  ;;  %v255_v53 = vrot.slane %v250_v51, %v254_v50  ;;  %v259_v54 = vrot.slane %v250_v51, %v258_v52  ;;  %v1000_v10 = vld [vmem:[#allocation11 + $0x10] sm:$0xff]   ;;  %v1001_v11 = vld [vmem:[#allocation11 + $0x8] sm:$0xff]   ;;  %v1002_v12 = vld [vmem:[#allocation11] sm:$0xff]  }
  0x59   :  { %847 = vmatprep.subr.bf16.mxu0 %v1213_v0  ;;  %349 = vmatpush1.bf16.msra.mxu1 %v974_v18 }
  0x5a   :  { %350 = vmatprep.subr.bf16.mxu1 %v975_v19 }
  0x5c   :  { %848 = vmatpush3.bf16.msra.mxu0 %v959_v9  ;;  %v999_v9 = vld [vmem:[#allocation11 + $0x18] sm:$0xff]  }
  0x5d   :  { %849 = vmatprep.subr.bf16.mxu0 %v1213_v0  ;;  %351 = vmatpush1.bf16.msra.mxu1 %v977_v20 }
  0x5e   :  { %352 = vmatprep.subr.bf16.mxu1 %v978_v21 }
  0x60   :  { %850 = vmatpush3.bf16.msra.mxu0 %v960_v13  ;;  %v776_v13 = vld [vmem:[%s1408_s7] ss:$0 sm:$0xff]  ;;  %s1216_s7 = smov [#allocation14]  }
  0x61   :  { %851 = vmatprep.subr.bf16.mxu0 %v1213_v0  ;;  %353 = vmatpush1.bf16.msra.mxu1 %v980_v22  ;;  %s722_s17 = sshll.u32 %s1216_s7, 4  ;;  %s723_s17 = int_to_ptr.vmem [resolvable:$true] %s722_s17 }
  0x62   :  { %354 = vmatprep.subr.bf16.mxu1 %v981_v23  ;;  %s1131_s19 = scalar_lea.vmem %s723_s17, 256  ;;  %p1136_p3 = scmp.lt.s32.totalorder %s723_s17, %s723_s17 }
  0x63   :  { %p1132_p2 = scmp.ne.s32.totalorder %s723_s17, %s1131_s19  ;;  %p1137_p4 = scmp.lt.s32.totalorder %s1131_s19, %s1131_s19 }
  0x64   :  { %852 = vmatpush3.bf16.msra.mxu0 %v961_v14 }
  0x65   :  { %853 = vmatprep.subr.bf16.mxu0 %v1213_v0  ;;  %355 = vmatpush1.bf16.msra.mxu1 %v983_v24  ;;  %p1138_p5 = por %p1137_p4, %p1136_p3 }
  0x66   :  { %356 = vmatprep.subr.bf16.mxu1 %v984_v26 }
  0x67   :  { %p1139_p6 = pnand %p1138_p5, %p1132_p2 }
  0x68   :  { %854 = vmatpush3.bf16.msra.mxu0 %v962_v15 }
  0x69   :  { %859 = vmatprep.subr.bf16.mxu0 %v1213_v0  ;;  %357 = vmatpush1.bf16.msra.mxu1 %v986_v27 }
  0x6a   :  { %879 = vmatprep.subr.bf16.mxu1 %v1213_v0 }
  0x6b   :  { %856 = vmatmul.mubr.bf16.vlgmr.msra.gmra.mxu0 %v120_v17 }
  0x6c   :  { %875 = vmatprep.mubr.msk.bf16.mxu0 %vm1214_vm0, %v1213_v0  ;;  %860 = vmatpush3.bf16.msra.mxu0 %v1316_v28 }
  0x6d   :  { %861 = vmatprep.subr.bf16.mxu0 %v1213_v0 }
  0x70   :  { %862 = vmatpush3.bf16.msra.mxu0 %v1325_v37 }
  0x71   :  { %863 = vmatprep.subr.bf16.mxu0 %v1213_v0 }
  0x74   :  { %864 = vmatpush3.bf16.msra.mxu0 %v1329_v38 }
  0x75   :  { %865 = vmatprep.subr.bf16.mxu0 %v1213_v0 }
  0x78   :  { %866 = vmatpush3.bf16.msra.mxu0 %v990_v39 }
  0x79   :  { %867 = vmatprep.subr.bf16.mxu0 %v1213_v0 }
  0x7c   :  { %868 = vmatpush3.bf16.msra.mxu0 %v991_v40 }
  0x7d   :  { %869 = vmatprep.subr.bf16.mxu0 %v1213_v0 }
  0x80   :  { %870 = vmatpush3.bf16.msra.mxu0 %v992_v41 }
  0x81   :  { %871 = vmatprep.subr.bf16.mxu0 %v1213_v0 }
  0x84   :  { %872 = vmatpush3.bf16.msra.mxu0 %v993_v42 }
  0x85   :  { %873 = vmatprep.subr.bf16.mxu0 %v1213_v0 }
  0x88   :  { %874 = vmatpush3.bf16.msra.mxu0 %v994_v43 }
  0x89   :  { %899 = vmatprep.subr.bf16.mxu0 %v1213_v0 }
 0x12b   :  { %v226_v30 = vpop.f32.mrf.mxu0 }
 0x12c   :  { %v227_v31 = vadd.f32 %v751_v29, %v226_v30 }
 0x12d   :  { %v857_v32 = vpop.f32.mrf.mxu0 }
 0x12e   :  { %1003 = vtanh.f32 %v227_v31 }
 0x12f   :  { %v229_v33 = vpop.f32.mrf.mxu0 }
 0x131   :  { %v858_v34 = vpop.f32.mrf.mxu0 }
 0x13b   :  { %v1004_v35 = vpop.eup %1003 }
 0x13c   :  { %v233_v36 = vpack.c.bf16 %v1004_v35, %v1004_v35 }
 0x13e   :  { %375 = vmatmul.mubr.bf16.vlgmr.msra.gmra.mxu1 %v233_v36 }
 0x13f   :  { %895 = vmatprep.mubr.msk.bf16.mxu1 %vm1214_vm0, %v1213_v0  ;;  %880 = vmatpush3.bf16.msra.mxu1 %v1338_v44 }
 0x140   :  { %881 = vmatprep.subr.bf16.mxu1 %v1213_v0 }
 0x143   :  { %882 = vmatpush3.bf16.msra.mxu1 %v1341_v45 }
 0x144   :  { %883 = vmatprep.subr.bf16.mxu1 %v1213_v0 }
 0x147   :  { %884 = vmatpush3.bf16.msra.mxu1 %v1345_v46 }
 0x148   :  { %885 = vmatprep.subr.bf16.mxu1 %v1213_v0 }
 0x14b   :  { %886 = vmatpush3.bf16.msra.mxu1 %v1349_v47 }
 0x14c   :  { %887 = vmatprep.subr.bf16.mxu1 %v1213_v0 }
 0x14f   :  { %888 = vmatpush3.bf16.msra.mxu1 %v999_v9 }
 0x150   :  { %889 = vmatprep.subr.bf16.mxu1 %v1213_v0 }
 0x153   :  { %890 = vmatpush3.bf16.msra.mxu1 %v1000_v10 }
 0x154   :  { %891 = vmatprep.subr.bf16.mxu1 %v1213_v0 }
 0x157   :  { %892 = vmatpush3.bf16.msra.mxu1 %v1001_v11 }
 0x158   :  { %893 = vmatprep.subr.bf16.mxu1 %v1213_v0 }
 0x15b   :  { %894 = vmatpush3.bf16.msra.mxu1 %v1002_v12 }
 0x15c   :  { %919 = vmatprep.subr.bf16.mxu1 %v1213_v0 }
 0x1fe   :  { %v376_v55 = vpop.f32.mrf.mxu1 }
 0x1ff   :  { %v377_v56 = vadd.f32 %v376_v55, %v255_v53 }
 0x200   :  { %v378_v57 = vpop.f32.mrf.mxu1 }
 0x201   :  { %383 = vst [vmem:[#allocation13] sm:$0xff] %v377_v56  ;;  %v379_v58 = vadd.f32 %v378_v57, %v259_v54 }
 0x202   :  { %v380_v59 = vpop.f32.mrf.mxu1 }
 0x203   :  { %384 = vst [vmem:[#allocation13 + $0x8] sm:$0xff] %v379_v58  ;;  %v385_v60 = vmul.f32 0.5, %v379_v58 }
 0x204   :  { %v381_v61 = vpop.f32.mrf.mxu1 }
 0x205   :  { %v386_v62 = vmul.f32 1.442695, %v385_v60 }
 0x207   :  { %1005 = vpow2.f32 %v386_v62 }
 0x214   :  { %v1006_v2 = vpop.eup %1005 }
 0x215   :  { %v435_v3 = vmul.f32 %v1006_v2, %v434_v63  ;;  %v619_v4 = vmul.f32 %v1006_v2, %v618_v1 }
 0x217   :  { %v436_v5 = vadd.f32 %v435_v3, %v377_v56  ;;  %v620_v6 = vadd.f32 %v619_v4, %v377_v56 }
 0x219   :  { %v438_v7 = vpack.c.bf16 %v436_v5, %v436_v5  ;;  %437 = vst [vmem:[#allocation14] sm:$0xff] %v436_v5  ;;  %621 = vst [vmem:[#allocation14 + $0x8] sm:$0xff] %v620_v6  ;;  %v622_v8 = vpack.c.bf16 %v620_v6, %v620_v6 }
 0x21b   :  { %876 = vmatmul.mubr.bf16.vlgmr.msra.gmra.mxu0 %v438_v7 }
 0x21c   :  { %900 = vmatpush3.bf16.msra.mxu0 %v1316_v28  ;;  %915 = vmatprep.mubr.msk.bf16.mxu0 %vm1214_vm0, %v1213_v0 }
 0x21d   :  { %901 = vmatprep.subr.bf16.mxu0 %v1213_v0 }
 0x220   :  { %902 = vmatpush3.bf16.msra.mxu0 %v1325_v37 }
 0x221   :  { %903 = vmatprep.subr.bf16.mxu0 %v1213_v0 }
 0x224   :  { %904 = vmatpush3.bf16.msra.mxu0 %v1329_v38 }
 0x225   :  { %905 = vmatprep.subr.bf16.mxu0 %v1213_v0 }
 0x228   :  { %906 = vmatpush3.bf16.msra.mxu0 %v990_v39 }
 0x229   :  { %907 = vmatprep.subr.bf16.mxu0 %v1213_v0 }
 0x22c   :  { %908 = vmatpush3.bf16.msra.mxu0 %v991_v40 }
 0x22d   :  { %909 = vmatprep.subr.bf16.mxu0 %v1213_v0 }
 0x230   :  { %910 = vmatpush3.bf16.msra.mxu0 %v992_v41 }
 0x231   :  { %911 = vmatprep.subr.bf16.mxu0 %v1213_v0 }
 0x234   :  { %912 = vmatpush3.bf16.msra.mxu0 %v993_v42 }
 0x235   :  { %913 = vmatprep.subr.bf16.mxu0 %v1213_v0 }
 0x238   :  { %914 = vmatpush3.bf16.msra.mxu0 %v994_v43 }
 0x23b   :  { %916 = vmatmul.mubr.bf16.vlgmr.msra.gmra.mxu0 %v622_v8 }
 0x2db   :  { %v521_v14 = vpop.f32.mrf.mxu0 }
 0x2dc   :  { %v522_v15 = vadd.f32 %v776_v13, %v521_v14 }
 0x2dd   :  { %v877_v16 = vpop.f32.mrf.mxu0 }
 0x2de   :  { %1007 = vtanh.f32 %v522_v15 }
 0x2df   :  { %v524_v17 = vpop.f32.mrf.mxu0 }
 0x2e1   :  { %v878_v18 = vpop.f32.mrf.mxu0 }
 0x2eb   :  { %v1008_v19 = vpop.eup %1007 }
 0x2ec   :  { %v528_v20 = vpack.c.bf16 %v1008_v19, %v1008_v19 }
 0x2ee   :  { %896 = vmatmul.mubr.bf16.vlgmr.msra.gmra.mxu1 %v528_v20 }
 0x2ef   :  { %920 = vmatpush3.bf16.msra.mxu1 %v1338_v44  ;;  %935 = vmatprep.mubr.msk.bf16.mxu1 %vm1214_vm0, %v1213_v0 }
 0x2f0   :  { %921 = vmatprep.subr.bf16.mxu1 %v1213_v0 }
 0x2f3   :  { %922 = vmatpush3.bf16.msra.mxu1 %v1341_v45 }
 0x2f4   :  { %923 = vmatprep.subr.bf16.mxu1 %v1213_v0 }
 0x2f7   :  { %924 = vmatpush3.bf16.msra.mxu1 %v1345_v46 }
 0x2f8   :  { %925 = vmatprep.subr.bf16.mxu1 %v1213_v0 }
 0x2fb   :  { %v657_v21 = vpop.f32.mrf.mxu0  ;;  %926 = vmatpush3.bf16.msra.mxu1 %v1349_v47 }
 0x2fc   :  { %v658_v22 = vadd.f32 %v776_v13, %v657_v21  ;;  %927 = vmatprep.subr.bf16.mxu1 %v1213_v0 }
 0x2fd   :  { %v917_v23 = vpop.f32.mrf.mxu0 }
 0x2fe   :  { %1009 = vtanh.f32 %v658_v22 }
 0x2ff   :  { %v660_v24 = vpop.f32.mrf.mxu0  ;;  %928 = vmatpush3.bf16.msra.mxu1 %v999_v9 }
 0x300   :  { %929 = vmatprep.subr.bf16.mxu1 %v1213_v0 }
 0x301   :  { %v918_v25 = vpop.f32.mrf.mxu0 }
 0x303   :  { %930 = vmatpush3.bf16.msra.mxu1 %v1000_v10 }
 0x304   :  { %931 = vmatprep.subr.bf16.mxu1 %v1213_v0 }
 0x307   :  { %932 = vmatpush3.bf16.msra.mxu1 %v1001_v11 }
 0x308   :  { %933 = vmatprep.subr.bf16.mxu1 %v1213_v0 }
 0x30b   :  { %v1010_v26 = vpop.eup %1009  ;;  %934 = vmatpush3.bf16.msra.mxu1 %v1002_v12 }
 0x30c   :  { %v664_v27 = vpack.c.bf16 %v1010_v26, %v1010_v26 }
 0x30e   :  { %936 = vmatmul.mubr.bf16.vlgmr.msra.gmra.mxu1 %v664_v27 }
 0x30f   :  { %1142 = shalt.err (!%p1139_p6)
}
 0x310   :  { %725 = dma.vmem_to_hbm [thread:$0]  %s723_s17, 256, %s1412_s11, [#allocation15]  }
 0x311   :  { %s1151_s4 = scalar_lea.vmem %s713_s1, 256  ;;  %p1156_p8 = scmp.lt.s32.totalorder %s713_s1, %s713_s1 }
 0x312   :  { %p1152_p7 = scmp.ne.s32.totalorder %s713_s1, %s1151_s4  ;;  %p1157_p9 = scmp.lt.s32.totalorder %s1151_s4, %s1151_s4 }
 0x314   :  { %p1158_p10 = por %p1157_p9, %p1156_p8 }
 0x316   :  { %p1159_p11 = pnand %p1158_p10, %p1152_p7 }
 0x318   :  { %1162 = shalt.err (!%p1159_p11)
}
 0x319   :  { %715 = dma.vmem_to_hbm [thread:$0]  %s713_s1, 256, %s1411_s10, [#allocation4]   ;;  %v777_v0 = vld [vmem:[%s1410_s9] ss:$0 sm:$0xff] }
 0x31a   :  { %s1218_s11 = smov [#allocation16]  }
 0x31b   :  { %s732_s26 = sshll.u32 %s1218_s11, 4  ;;  %s733_s26 = int_to_ptr.vmem [resolvable:$true] %s732_s26 }
 0x31c   :  { %s1171_s27 = scalar_lea.vmem %s733_s26, 256  ;;  %p1176_p13 = scmp.lt.s32.totalorder %s733_s26, %s733_s26 }
 0x31d   :  { %p1172_p12 = scmp.ne.s32.totalorder %s733_s26, %s1171_s27  ;;  %p1177_p0 = scmp.lt.s32.totalorder %s1171_s27, %s1171_s27 }
 0x31f   :  { %p1178_p1 = por %p1177_p0, %p1176_p13 }
 0x321   :  { %p1179_p2 = pnand %p1178_p1, %p1172_p12 }
 0x3ae   :  { %v611_v28 = vpop.f32.mrf.mxu1 }
 0x3af   :  { %v612_v29 = vadd.f32 %v777_v0, %v611_v28 }
 0x3b0   :  { %v897_v30 = vpop.f32.mrf.mxu1 }
 0x3b1   :  { %617 = vst [vmem:[#allocation16] sm:$0xff] %v612_v29 }
 0x3b2   :  { %v614_v31 = vpop.f32.mrf.mxu1 }
 0x3b4   :  { %v898_v32 = vpop.f32.mrf.mxu1 }
 0x3ce   :  { %v699_v33 = vpop.f32.mrf.mxu1 }
 0x3cf   :  { %v700_v34 = vadd.f32 %v777_v0, %v699_v33 }
 0x3d0   :  { %v937_v35 = vpop.f32.mrf.mxu1 }
 0x3d1   :  { %705 = vst [vmem:[#allocation16 + $0x8] sm:$0xff] %v700_v34 }
 0x3d2   :  { %v702_v36 = vpop.f32.mrf.mxu1 }
 0x3d3   :  { %1182 = shalt.err (!%p1179_p2)
}
 0x3d4   :  { %735 = dma.vmem_to_hbm [thread:$0]  %s733_s26, 256, %s1413_s12, [#allocation15]   ;;  %v938_v37 = vpop.f32.mrf.mxu1 }
 0x3d5   :  { %1199 = dma.done.wait [#allocation4], 256  }
 0x3d6   :  { %1200 = vsyncadd [#allocation4], 4294967040 }
 0x3d7   :  { %1201 = dma.done.wait [#allocation15], 512  }
 0x3d8   :  { %1202 = vsyncadd [#allocation15], 4294966784 }
 0x3d9   :  { %745 = vsyncpa [#allocation3], 1 }
 0x3da   :  { %746 = vsyncpa [#allocation6], 1 }
 0x3db   :  { %747 = vsyncpa [#allocation9], 1 }
 0x3dc   :  { %748 = vsyncpa [#allocation12], 1 }
 0x3dd   :  { %749 = vsyncpa [#allocation4], 1 }
 0x3de   :  { %750 = vsyncpa [#allocation15], 1 }

</bundles_post_ra>
